<compile_context>
chip_gen: v7x
topology: tpu7x:2x2x1
jax: 0.10.0
libtpu: 0.0.40
codegen_flags: <defaults>
</compile_context>

<pallas_src>
import jax
import jax.numpy as jnp
from jax.experimental import pallas as pl
from jax.experimental.pallas import tpu as pltpu

# ---------------- model configuration (mirrors RegretNet __init__ args) -----
N_AGENTS = 3
N_ITEMS = 4
HIDDEN = 32
N_HIDDEN_LAYERS = 2
ACTIVATION = "tanh"          # args['activation'] == 'tanh'
SEPARATE = False             # args['separate'] = False -> shared trunk
BATCH = 200                  # small demo batch (exercises padding + 2 tiles)

INPUT_SIZE = N_AGENTS * N_ITEMS                  # 12
ALLOC_SIZE = (N_AGENTS + 1) * N_ITEMS            # 16 (includes dummy agent)
PAY_SIZE = N_AGENTS                              # 3
HEAD_SIZE = ALLOC_SIZE + PAY_SIZE                # 19 (fused head rows)
ALLOC_ROWS = N_AGENTS * N_ITEMS                  # 12 (dummy agent dropped)
OUT_ROWS = ALLOC_ROWS + PAY_SIZE                 # 15 fused output rows

# MXU operand dtype: bf16 is native on v5e/v6e/v7x MXUs (f32 needs multi-pass
# emulation on v6e/v7x).  Accumulation is f32; elementwise math stays f32.
MXU_DTYPE = jnp.bfloat16


def _act(x):
    if ACTIVATION == "tanh":
        return jnp.tanh(x)
    return jnp.maximum(x, 0.0)


# ------------------------------ kernel --------------------------------------
def regretnet_kernel(x_ref, w0_ref, b0_ref, wh_ref, bh_ref, whead_ref,
                     bhead_ref, out_ref):
    """Transposed layout: every activation is (features, batch_tile)."""
    x = x_ref[...]                                               # (12, Bt) f32

    # ---- shared trunk MLP (bf16 MXU operands, f32 accumulate) ---------------
    h = _act(jnp.dot(w0_ref[...], x.astype(MXU_DTYPE),
                     preferred_element_type=jnp.float32) + b0_ref[...])
    for l in range(N_HIDDEN_LAYERS):
        h = _act(jnp.dot(wh_ref[l], h.astype(MXU_DTYPE),
                         preferred_element_type=jnp.float32) + bh_ref[l])

    # ---- fused allocation + payment heads (single matmul) -------------------
    head = jnp.dot(whead_ref[...], h.astype(MXU_DTYPE),
                   preferred_element_type=jnp.float32) + bhead_ref[...]
    # rows [0, 16): alloc logits, agent-major (row = agent*N_ITEMS + item)
    # rows [16, 19): payment logits

    # ---- softmax over the agent axis via sublane rolls (XLU) ----------------
    # For row r = a*4 + i the softmax group is {i, i+4, i+8, i+12} (stride 4),
    # so a roll-by-4 / roll-by-8 tree gives every row its full group max/sum.
    logits = head[0:ALLOC_SIZE, :]                               # (16, Bt)
    m = jnp.maximum(logits, pltpu.roll(logits, N_ITEMS, 0))
    m = jnp.maximum(m, pltpu.roll(m, 2 * N_ITEMS, 0))
    e = jnp.exp(logits - m)
    d = e + pltpu.roll(e, N_ITEMS, 0)
    d = d + pltpu.roll(d, 2 * N_ITEMS, 0)                        # group sums
    inv = pl.reciprocal(d, approx=True)          # EUP slot (cheap)
    inv = inv * (2.0 - d * inv)                  # one Newton step -> ~f32 acc.
    soft = e * inv                               # (16, Bt)

    # ---- View_Cut: drop the dummy (last) agent ------------------------------
    alloc = soft[0:ALLOC_ROWS, :]                                # (12, Bt)

    # ---- payments = sigmoid(pay logits) * sum_items(alloc * reports) --------
    pay_sig = jax.nn.sigmoid(head[ALLOC_SIZE:HEAD_SIZE, :])      # (3, Bt)
    prod = alloc * x                                             # (12, Bt)
    pay_sum = jnp.concatenate(
        [jnp.sum(prod[a * N_ITEMS:(a + 1) * N_ITEMS, :], axis=0, keepdims=True)
         for a in range(N_AGENTS)], axis=0)                      # (3, Bt)

    # ---- single fused lane-dense output block -------------------------------
    out_ref[...] = jnp.concatenate([alloc, pay_sig * pay_sum], axis=0)


# ------------------------------ wrapper -------------------------------------
def regretnet_forward(reports, params, *, b_tile=1024):
    """reports: (B, n_agents, n_items) f32 -> (allocs (B,A,I), payments (B,A))."""
    B = reports.shape[0]
    # Cap the tile so there are >= 2 grid steps whenever B allows it: the
    # "parallel" batch axis then shards across both TensorCores on v7x.
    b_tile = max(128, min(b_tile, 128 * pl.cdiv(pl.cdiv(B, 2), 128)))
    n_tiles = pl.cdiv(B, b_tile)
    b_pad = b_tile * n_tiles

    # Batch on the 128-lane axis; under jit the reshape+transpose+pad fuse
    # into a single producer op feeding the pallas_call.
    x_t = reports.reshape(B, INPUT_SIZE).T                       # (12, B)
    if b_pad != B:
        x_t = jnp.pad(x_t, ((0, 0), (0, b_pad - B)))

    # Host-side bf16 pre-cast of the weights (no per-step casts in-kernel,
    # half the weight DMA bytes).  Biases stay f32 (added post-accumulate).
    w0 = params["w0"].astype(MXU_DTYPE)
    wh = params["wh"].astype(MXU_DTYPE)
    whead = params["whead"].astype(MXU_DTYPE)
    b0, bh, bhead = params["b0"], params["bh"], params["bhead"]

    def batch_tiled(rows):
        return pl.BlockSpec((rows, b_tile), lambda i: (0, i))

    def const(shape):
        zeros = (0,) * len(shape)
        return pl.BlockSpec(shape, lambda i: zeros)

    # NOTE: the constant weight/bias blocks never change across the grid, so
    # Pallas skips re-copies; pipeline_mode=pl.Buffered(1) would also drop the
    # duplicate buffer, but the few KB saved are not worth the extra knob here.
    in_specs = [
        batch_tiled(INPUT_SIZE),                      # reports^T (batch-tiled)
        const(w0.shape), const(b0.shape),
        const(wh.shape), const(bh.shape),
        const(whead.shape), const(bhead.shape),
    ]

    out = pl.pallas_call(
        regretnet_kernel,
        grid=(n_tiles,),
        in_specs=in_specs,
        out_specs=batch_tiled(OUT_ROWS),
        out_shape=jax.ShapeDtypeStruct((OUT_ROWS, b_pad), jnp.float32),
        compiler_params=pltpu.CompilerParams(
            dimension_semantics=("parallel",)),
    )(x_t, w0, b0, wh, bh, whead, bhead)

    allocs = out[:ALLOC_ROWS, :B].T.reshape(B, N_AGENTS, N_ITEMS)
    payments = out[ALLOC_ROWS:, :B].T
    return allocs, payments


# ------------------------------ params / reference --------------------------
def _glorot(key, fan_out, fan_in):
    bound = jnp.sqrt(6.0 / (fan_in + fan_out))
    return jax.random.uniform(key, (fan_out, fan_in), jnp.float32, -bound, bound)


def make_params(key):
    n_linear = 1 + N_HIDDEN_LAYERS + 2
    keys = jax.random.split(key, 2 * n_linear)
    ki = iter(keys)

    def lin(fan_out, fan_in):
        w = _glorot(next(ki), fan_out, fan_in)
        bound = 1.0 / jnp.sqrt(float(fan_in))
        b = jax.random.uniform(next(ki), (fan_out, 1), jnp.float32, -bound, bound)
        return w, b

    w0, b0 = lin(HIDDEN, INPUT_SIZE)
    whs, bhs = [], []
    for _ in range(N_HIDDEN_LAYERS):
        w, b = lin(HIDDEN, HIDDEN)
        whs.append(w)
        bhs.append(b)
    wa, ba = lin(ALLOC_SIZE, HIDDEN)     # allocation head
    wp, bp = lin(PAY_SIZE, HIDDEN)       # payment head
    return {
        "w0": w0, "b0": b0,
        "wh": jnp.stack(whs), "bh": jnp.stack(bhs),
        "whead": jnp.concatenate([wa, wp], axis=0),   # fused heads
        "bhead": jnp.concatenate([ba, bp], axis=0),
    }


def regretnet_reference(reports, params, matmul_dtype=jnp.float32):
    """Pure-JAX reference matching the PyTorch forward.

    matmul_dtype=bf16 reproduces the kernel's MXU operand quantization
    (weights + activations cast to bf16, f32 accumulation)."""
    B = reports.shape[0]
    cast = lambda a: a.astype(matmul_dtype)

    def dense(h, w, b):
        return jnp.dot(cast(h), cast(w).T,
                       preferred_element_type=jnp.float32) + b.T

    x = reports.reshape(B, INPUT_SIZE)
    h = _act(dense(x, params["w0"], params["b0"]))
    for l in range(N_HIDDEN_LAYERS):
        h = _act(dense(h, params["wh"][l], params["bh"][l]))
    head = dense(h, params["whead"], params["bhead"])            # (B, 19)
    logits = head[:, :ALLOC_SIZE].reshape(B, N_AGENTS + 1, N_ITEMS)
    soft = jax.nn.softmax(logits, axis=1)
    allocs = soft[:, :-1, :]                                     # View_Cut
    pay = jax.nn.sigmoid(head[:, ALLOC_SIZE:])
    payments = pay * jnp.sum(allocs * reports, axis=2)
    return allocs, payments


if __name__ == "__main__":
    key = jax.random.PRNGKey(0)
    k_rep, k_par = jax.random.split(key)
    reports = jax.random.uniform(k_rep, (BATCH, N_AGENTS, N_ITEMS), jnp.float32)
    params = make_params(k_par)

    # jit fuses the pad/reshape/transpose producer and the output un-transpose.
    fwd = jax.jit(regretnet_forward)
    allocs, payments = fwd(reports, params)
    jax.block_until_ready((allocs, payments))

    assert allocs.shape == (BATCH, N_AGENTS, N_ITEMS)
    assert payments.shape == (BATCH, N_AGENTS)

    # (1) numerics-matched reference: same bf16 MXU operands, f32 accumulate.
    ref_a, ref_p = regretnet_reference(reports, params, matmul_dtype=MXU_DTYPE)
    assert jnp.allclose(allocs, ref_a, atol=5e-3), \
        float(jnp.max(jnp.abs(allocs - ref_a)))
    assert jnp.allclose(payments, ref_p, atol=5e-3), \
        float(jnp.max(jnp.abs(payments - ref_p)))

    # (2) sanity check against the full-f32 module semantics (the only delta
    # is bf16 MXU operand quantization -> loose tolerance).
    f32_a, f32_p = regretnet_reference(reports, params, matmul_dtype=jnp.float32)
    assert jnp.allclose(allocs, f32_a, atol=5e-2), \
        float(jnp.max(jnp.abs(allocs - f32_a)))
    assert jnp.allclose(payments, f32_p, atol=5e-2), \
        float(jnp.max(jnp.abs(payments - f32_p)))

    print("KERNEL_OK")
</pallas_src>

<mosaic_0001>
module attributes {stable_mosaic.version = 11 : i64} {
  func.func @regretnet_kernel(%arg0: i32, %arg1: memref<12x128xf32, #tpu.memory_space<vmem>>, %arg2: memref<32x12xbf16, #tpu.memory_space<vmem>>, %arg3: memref<32x1xf32, #tpu.memory_space<vmem>>, %arg4: memref<2x32x32xbf16, #tpu.memory_space<vmem>>, %arg5: memref<2x32x1xf32, #tpu.memory_space<vmem>>, %arg6: memref<19x32xbf16, #tpu.memory_space<vmem>>, %arg7: memref<19x1xf32, #tpu.memory_space<vmem>>, %arg8: memref<15x128xf32, #tpu.memory_space<vmem>>) attributes {dimension_semantics = [#tpu.dimension_semantics<parallel>], iteration_bounds = array<i64: 2>, scalar_prefetch = 0 : i64, scratch_operands = 0 : i64, tpu.core_type = #tpu.core_type<tc>, window_params = [{transform_indices = @transform_0, window_bounds = array<i64: 12, 128>}, {pipeline_mode = #tpu.pipeline_mode<synchronous>, transform_indices = @transform_1, window_bounds = array<i64: 32, 12>}, {pipeline_mode = #tpu.pipeline_mode<synchronous>, transform_indices = @transform_2, window_bounds = array<i64: 32, 1>}, {pipeline_mode = #tpu.pipeline_mode<synchronous>, transform_indices = @transform_3, window_bounds = array<i64: 2, 32, 32>}, {pipeline_mode = #tpu.pipeline_mode<synchronous>, transform_indices = @transform_4, window_bounds = array<i64: 2, 32, 1>}, {pipeline_mode = #tpu.pipeline_mode<synchronous>, transform_indices = @transform_5, window_bounds = array<i64: 19, 32>}, {pipeline_mode = #tpu.pipeline_mode<synchronous>, transform_indices = @transform_6, window_bounds = array<i64: 19, 1>}, {transform_indices = @transform_7, window_bounds = array<i64: 15, 128>}]} {
    %c0 = arith.constant 0 : index
    %c0_0 = arith.constant 0 : index
    %0 = vector.load %arg1[%c0, %c0_0] : memref<12x128xf32, #tpu.memory_space<vmem>>, vector<12x128xf32>
    %c0_1 = arith.constant 0 : index
    %c0_2 = arith.constant 0 : index
    %1 = vector.load %arg2[%c0_1, %c0_2] : memref<32x12xbf16, #tpu.memory_space<vmem>>, vector<32x12xbf16>
    %2 = arith.truncf %0 : vector<12x128xf32> to vector<12x128xbf16>
    %cst = arith.constant dense<0.000000e+00> : vector<32x128xf32>
    %3 = tpu.matmul %1, %2, %cst {dimension_numbers = #tpu.dot_dimension_numbers<[1], [0], [0], [1], [0, 0, 1, 1], [], []>} : vector<32x12xbf16>, vector<12x128xbf16>, vector<32x128xf32> -> vector<32x128xf32>
    %c0_3 = arith.constant 0 : index
    %c0_4 = arith.constant 0 : index
    %4 = vector.load %arg3[%c0_3, %c0_4] : memref<32x1xf32, #tpu.memory_space<vmem>>, vector<32x1xf32>
    %5 = vector.broadcast %4 : vector<32x1xf32> to vector<32x128xf32>
    %6 = arith.addf %3, %5 : vector<32x128xf32>
    %7 = math.tanh %6 : vector<32x128xf32>
    %c0_5 = arith.constant 0 : index
    %c0_6 = arith.constant 0 : index
    %c0_7 = arith.constant 0 : index
    %8 = vector.load %arg4[%c0_5, %c0_6, %c0_7] : memref<2x32x32xbf16, #tpu.memory_space<vmem>>, vector<1x32x32xbf16>
    %9 = vector.shape_cast %8 : vector<1x32x32xbf16> to vector<32x32xbf16>
    %10 = arith.truncf %7 : vector<32x128xf32> to vector<32x128xbf16>
    %cst_8 = arith.constant dense<0.000000e+00> : vector<32x128xf32>
    %11 = tpu.matmul %9, %10, %cst_8 {dimension_numbers = #tpu.dot_dimension_numbers<[1], [0], [0], [1], [0, 0, 1, 1], [], []>} : vector<32x32xbf16>, vector<32x128xbf16>, vector<32x128xf32> -> vector<32x128xf32>
    %c0_9 = arith.constant 0 : index
    %c0_10 = arith.constant 0 : index
    %c0_11 = arith.constant 0 : index
    %12 = vector.load %arg5[%c0_9, %c0_10, %c0_11] : memref<2x32x1xf32, #tpu.memory_space<vmem>>, vector<1x32x1xf32>
    %13 = vector.shape_cast %12 : vector<1x32x1xf32> to vector<32x1xf32>
    %14 = vector.broadcast %13 : vector<32x1xf32> to vector<32x128xf32>
    %15 = arith.addf %11, %14 : vector<32x128xf32>
    %16 = math.tanh %15 : vector<32x128xf32>
    %c1 = arith.constant 1 : index
    %c0_12 = arith.constant 0 : index
    %c0_13 = arith.constant 0 : index
    %17 = vector.load %arg4[%c1, %c0_12, %c0_13] : memref<2x32x32xbf16, #tpu.memory_space<vmem>>, vector<1x32x32xbf16>
    %18 = vector.shape_cast %17 : vector<1x32x32xbf16> to vector<32x32xbf16>
    %19 = arith.truncf %16 : vector<32x128xf32> to vector<32x128xbf16>
    %cst_14 = arith.constant dense<0.000000e+00> : vector<32x128xf32>
    %20 = tpu.matmul %18, %19, %cst_14 {dimension_numbers = #tpu.dot_dimension_numbers<[1], [0], [0], [1], [0, 0, 1, 1], [], []>} : vector<32x32xbf16>, vector<32x128xbf16>, vector<32x128xf32> -> vector<32x128xf32>
    %c1_15 = arith.constant 1 : index
    %c0_16 = arith.constant 0 : index
    %c0_17 = arith.constant 0 : index
    %21 = vector.load %arg5[%c1_15, %c0_16, %c0_17] : memref<2x32x1xf32, #tpu.memory_space<vmem>>, vector<1x32x1xf32>
    %22 = vector.shape_cast %21 : vector<1x32x1xf32> to vector<32x1xf32>
    %23 = vector.broadcast %22 : vector<32x1xf32> to vector<32x128xf32>
    %24 = arith.addf %20, %23 : vector<32x128xf32>
    %25 = math.tanh %24 : vector<32x128xf32>
    %c0_18 = arith.constant 0 : index
    %c0_19 = arith.constant 0 : index
    %26 = vector.load %arg6[%c0_18, %c0_19] : memref<19x32xbf16, #tpu.memory_space<vmem>>, vector<19x32xbf16>
    %27 = arith.truncf %25 : vector<32x128xf32> to vector<32x128xbf16>
    %cst_20 = arith.constant dense<0.000000e+00> : vector<19x128xf32>
    %28 = tpu.matmul %26, %27, %cst_20 {dimension_numbers = #tpu.dot_dimension_numbers<[1], [0], [0], [1], [0, 0, 1, 1], [], []>} : vector<19x32xbf16>, vector<32x128xbf16>, vector<19x128xf32> -> vector<19x128xf32>
    %c0_21 = arith.constant 0 : index
    %c0_22 = arith.constant 0 : index
    %29 = vector.load %arg7[%c0_21, %c0_22] : memref<19x1xf32, #tpu.memory_space<vmem>>, vector<19x1xf32>
    %30 = vector.broadcast %29 : vector<19x1xf32> to vector<19x128xf32>
    %31 = arith.addf %28, %30 : vector<19x128xf32>
    %32 = vector.extract_strided_slice %31 {offsets = [0, 0], sizes = [16, 128], strides = [1, 1]} : vector<19x128xf32> to vector<16x128xf32>
    %c4_i32 = arith.constant 4 : i32
    %33 = tpu.dynamic_rotate %32 by %c4_i32 dim 0 : vector<16x128xf32>, i32 -> vector<16x128xf32>
    %34 = arith.maximumf %32, %33 : vector<16x128xf32>
    %c8_i32 = arith.constant 8 : i32
    %35 = tpu.dynamic_rotate %34 by %c8_i32 dim 0 : vector<16x128xf32>, i32 -> vector<16x128xf32>
    %36 = arith.maximumf %34, %35 : vector<16x128xf32>
    %37 = arith.subf %32, %36 : vector<16x128xf32>
    %38 = math.exp %37 : vector<16x128xf32>
    %c4_i32_23 = arith.constant 4 : i32
    %39 = tpu.dynamic_rotate %38 by %c4_i32_23 dim 0 : vector<16x128xf32>, i32 -> vector<16x128xf32>
    %40 = arith.addf %38, %39 : vector<16x128xf32>
    %c8_i32_24 = arith.constant 8 : i32
    %41 = tpu.dynamic_rotate %40 by %c8_i32_24 dim 0 : vector<16x128xf32>, i32 -> vector<16x128xf32>
    %42 = arith.addf %40, %41 : vector<16x128xf32>
    %43 = tpu.reciprocal %42 {approx = true} : vector<16x128xf32> -> vector<16x128xf32>
    %44 = arith.mulf %42, %43 : vector<16x128xf32>
    %cst_25 = arith.constant 2.000000e+00 : f32
    %45 = vector.broadcast %cst_25 : f32 to vector<16x128xf32>
    %46 = arith.subf %45, %44 : vector<16x128xf32>
    %47 = arith.mulf %43, %46 : vector<16x128xf32>
    %48 = arith.mulf %38, %47 : vector<16x128xf32>
    %49 = vector.extract_strided_slice %48 {offsets = [0, 0], sizes = [12, 128], strides = [1, 1]} : vector<16x128xf32> to vector<12x128xf32>
    %50 = vector.extract_strided_slice %31 {offsets = [16, 0], sizes = [3, 128], strides = [1, 1]} : vector<19x128xf32> to vector<3x128xf32>
    %51 = arith.negf %50 : vector<3x128xf32>
    %52 = math.exp %51 : vector<3x128xf32>
    %cst_26 = arith.constant 1.000000e+00 : f32
    %53 = vector.broadcast %cst_26 : f32 to vector<3x128xf32>
    %54 = arith.addf %53, %52 : vector<3x128xf32>
    %55 = arith.divf %53, %54 : vector<3x128xf32>
    %56 = arith.mulf %49, %0 : vector<12x128xf32>
    %57 = vector.extract_strided_slice %56 {offsets = [0, 0], sizes = [4, 128], strides = [1, 1]} : vector<12x128xf32> to vector<4x128xf32>
    %cst_27 = arith.constant dense<0.000000e+00> : vector<128xf32>
    %58 = vector.multi_reduction <add>, %57, %cst_27 [0] : vector<4x128xf32> to vector<128xf32>
    %59 = vector.shape_cast %58 : vector<128xf32> to vector<1x128xf32>
    %60 = vector.extract_strided_slice %56 {offsets = [4, 0], sizes = [4, 128], strides = [1, 1]} : vector<12x128xf32> to vector<4x128xf32>
    %cst_28 = arith.constant dense<0.000000e+00> : vector<128xf32>
    %61 = vector.multi_reduction <add>, %60, %cst_28 [0] : vector<4x128xf32> to vector<128xf32>
    %62 = vector.shape_cast %61 : vector<128xf32> to vector<1x128xf32>
    %63 = vector.extract_strided_slice %56 {offsets = [8, 0], sizes = [4, 128], strides = [1, 1]} : vector<12x128xf32> to vector<4x128xf32>
    %cst_29 = arith.constant dense<0.000000e+00> : vector<128xf32>
    %64 = vector.multi_reduction <add>, %63, %cst_29 [0] : vector<4x128xf32> to vector<128xf32>
    %65 = vector.shape_cast %64 : vector<128xf32> to vector<1x128xf32>
    %66 = tpu.concatenate %59, %62, %65 in 0 : vector<1x128xf32>, vector<1x128xf32>, vector<1x128xf32> -> vector<3x128xf32>
    %67 = arith.mulf %55, %66 : vector<3x128xf32>
    %68 = tpu.concatenate %49, %67 in 0 : vector<12x128xf32>, vector<3x128xf32> -> vector<15x128xf32>
    %c0_30 = arith.constant 0 : index
    %c0_31 = arith.constant 0 : index
    %69 = vector.load %arg8[%c0_30, %c0_31] : memref<15x128xf32, #tpu.memory_space<vmem>>, vector<15x128xf32>
    tpu.vector_store %arg8[%c0_30, %c0_31], %68 {strides = array<i32>} : memref<15x128xf32, #tpu.memory_space<vmem>>, vector<15x128xf32>,
    return
  }
  func.func @transform_0(%arg0: i32) -> (i32, i32) {
    %c0_i32 = arith.constant 0 : i32
    %c0_i32_0 = arith.constant 0 : i32
    return %c0_i32, %arg0 : i32, i32
  }
  func.func @transform_1(%arg0: i32) -> (i32, i32) {
    %c0_i32 = arith.constant 0 : i32
    %c0_i32_0 = arith.constant 0 : i32
    %c0_i32_1 = arith.constant 0 : i32
    return %c0_i32, %c0_i32_0 : i32, i32
  }
  func.func @transform_2(%arg0: i32) -> (i32, i32) {
    %c0_i32 = arith.constant 0 : i32
    %c0_i32_0 = arith.constant 0 : i32
    %c0_i32_1 = arith.constant 0 : i32
    return %c0_i32, %c0_i32_0 : i32, i32
  }
  func.func @transform_3(%arg0: i32) -> (i32, i32, i32) {
    %c0_i32 = arith.constant 0 : i32
    %c0_i32_0 = arith.constant 0 : i32
    %c0_i32_1 = arith.constant 0 : i32
    %c0_i32_2 = arith.constant 0 : i32
    return %c0_i32, %c0_i32_0, %c0_i32_1 : i32, i32, i32
  }
  func.func @transform_4(%arg0: i32) -> (i32, i32, i32) {
    %c0_i32 = arith.constant 0 : i32
    %c0_i32_0 = arith.constant 0 : i32
    %c0_i32_1 = arith.constant 0 : i32
    %c0_i32_2 = arith.constant 0 : i32
    return %c0_i32, %c0_i32_0, %c0_i32_1 : i32, i32, i32
  }
  func.func @transform_5(%arg0: i32) -> (i32, i32) {
    %c0_i32 = arith.constant 0 : i32
    %c0_i32_0 = arith.constant 0 : i32
    %c0_i32_1 = arith.constant 0 : i32
    return %c0_i32, %c0_i32_0 : i32, i32
  }
  func.func @transform_6(%arg0: i32) -> (i32, i32) {
    %c0_i32 = arith.constant 0 : i32
    %c0_i32_0 = arith.constant 0 : i32
    %c0_i32_1 = arith.constant 0 : i32
    return %c0_i32, %c0_i32_0 : i32, i32
  }
  func.func @transform_7(%arg0: i32) -> (i32, i32) {
    %c0_i32 = arith.constant 0 : i32
    %c0_i32_0 = arith.constant 0 : i32
    return %c0_i32, %arg0 : i32, i32
  }
}

</mosaic_0001>

<bundles_post_ra>
// kernel: regretnet_forward.1
= control target key start
LH: loop header
LB: loop body
LE: loop exit
PB: predicated region body
PF: predicated region fallthrough
CT: control target
= control target key end

     0   :  { %s1095_s24 = smov 0   ;;  %s1097_s25 = smov 0   ;;  %s1258_s0 = inlined_call_operand.vmem [shape: f32[12,256], index: 0, kind: input, shape index: {}]   ;;  %s1259_s1 = inlined_call_operand.vmem [shape: bf16[32,12], index: 1, kind: input, shape index: {}]   ;;  %s1260_s2 = inlined_call_operand.vmem [shape: f32[32,1], index: 2, kind: input, shape index: {}]   ;;  %s1261_s3 = inlined_call_operand.vmem [shape: bf16[2,32,32], index: 3, kind: input, shape index: {}]   ;;  %s1262_s4 = inlined_call_operand.vmem [shape: f32[2,32,1], index: 4, kind: input, shape index: {}]   ;;  %s1263_s5 = inlined_call_operand.vmem [shape: bf16[19,32], index: 5, kind: input, shape index: {}]   ;;  %s1264_s6 = inlined_call_operand.vmem [shape: f32[19,1], index: 6, kind: input, shape index: {}]   ;;  %s1265_s7 = inlined_call_operand.vmem [shape: f32[15,256], index: 7, kind: output, shape index: {}]  }
   0x1   :  { %s1099_s26 = smov 0  }
   0x2 LB: > { %s877_s27 = sadd.s32 4294967295, %s1052_s26   ;;  %s1112_s28 = sadd.s32 1, %s1052_s26   ;;  %s1052_s26 = sphi %s1099_s26, %s1269_s26   ;;  %s1048_s25 = sphi %s1097_s25, %s1268_s25   ;;  %s1044_s24 = sphi %s1095_s24, %s1267_s24  }
   0x3   : > { %s21_s29 = ssub.s32 %s1052_s26, %s1112_s28  ;;  %s24_s30 = sadd.s32 1, %s1048_s25 }
   0x4   : > { %p22_p0 = scmp.eq.s32.totalorder %s21_s29, 0  ;;  %p31_p1 = scmp.ne.s32.totalorder %s1048_s25, %s1044_s24 }
   0x5   : > { %p32_p2 = scmp.eq.s32.totalorder %s1052_s26, 0  ;;  %p187_p3 = scmp.eq.s32.totalorder %s877_s27, 1 }
   0x6   : > { %s1123_s8 = scalar_select %p22_p0, %s1048_s25, %s24_s30  }
   0x7   : > { %p33_p4 = por %p32_p2, %p31_p1  ;;  %p1125_p5 = por %p187_p3, %p31_p1 }
   0x8   : > { %p880_p6 = scmp.ge.s32.totalorder %s1052_s26, 2 }
   0xa   : > { %227 = sbr.rel (%p880_p6) target bundleno = 24 (0x18), region = 40 }
  0x11   : > { %230 = sbr.rel (!%p33_p4) target bundleno = 24 (0x18), region = 44  ;;  %s232_s10 = sand.u32 (%p33_p4), 1, %s1048_s25  }
  0x12   : > { %s882_s11 = sshll.u32 (%p33_p4), %s1052_s26, 3  ;;  %s881_s12 = sshll.u32 (%p33_p4), %s232_s10, 4 }
  0x13   : > { %s236_s15 = scalar_lea.vmem (%p33_p4), %s1258_s0, %s882_s11  ;;  %s234_s16 = scalar_lea.vmem (%p33_p4), [#allocation2], %s881_s12 }
  0x14   : > { %v266_v0 = vld [vmem:[%s236_s15] sm:$0xff] (%p33_p4)  ;;  %v268_v1 = vld [vmem:[%s236_s15 + $0x10] sm:$0xff] (%p33_p4) }
  0x15   : > { %267 = vst [vmem:[%s234_s16] sm:$0xff] (%p33_p4), %v266_v0  ;;  %269 = vst [vmem:[%s234_s16 + $0x8] sm:$0xff] (%p33_p4), %v268_v1 }
  0x18 PF: > { %p883_p7 = scmp.ge.s32.totalorder %s1052_s26, 1  ;;  %p274_p8 = scmp.lt.s32.totalorder %s1052_s26, 3 }
  0x1a   : > { %p275_p9 = pnand %p883_p7, %p274_p8 }
  0x1b   : > { %s281_s17 = sand.u32 (!%p275_p9), 1, %s1044_s24   ;;  %v988_v2 = vld [vmem:[%s1259_s1] sm:$0xff] (!%p275_p9)   ;;  %vm353_vm0 = vcmask (!%p275_p9), 97280   ;;  %vm360_vm1 = vcmask (!%p275_p9), 1045504   ;;  %v1054_v6 = vmov (!%p275_p9), 0   ;;  %v321_v8 = vld [vmem:[%s1260_s2 + $0x10] sm:$0xff] (!%p275_p9) }
  0x1c   : > { %278 = sbr.rel (%p275_p9) target bundleno = 1050 (0x41a), region = 82  ;;  %s1138_s18 = sshll.u32 (!%p275_p9), %s281_s17, 4  ;;  %v319_v3 = vld [vmem:[%s1260_s2] sm:$0xff] (!%p275_p9)  ;;  %932 = vmatprep.mubr.msk.bf16.mxu0 (!%p275_p9), %vm353_vm0, %v988_v2  ;;  %986 = vset.pattern.permute.xlu0 (!%p275_p9), %v1054_v6  ;;  %v320_v9 = vld [vmem:[%s1260_s2 + $0x8] sm:$0xff] (!%p275_p9)  ;;  %v322_v12 = vld [vmem:[%s1260_s2 + $0x18] sm:$0xff] (!%p275_p9)  ;;  %vm457_vm2 = vcmask (!%p275_p9), 261120  }
  0x1d   : > { %s283_s23 = scalar_lea.vmem (!%p275_p9), [#allocation2], %s1138_s18  ;;  %325 = vperm.xlu0 (!%p275_p9), %986, %v319_v3   ;;  %987 = vset.pattern.permute.xlu1 (!%p275_p9), %v1054_v6  ;;  %v989_v11 = vld [vmem:[%s1259_s1 + $0x8] sm:$0xff] (!%p275_p9)   ;;  %v423_v13 = vld [vmem:[%s1262_s4] sm:$0xff] (!%p275_p9)  ;;  %v425_v15 = vld [vmem:[%s1262_s4 + $0x10] sm:$0xff] (!%p275_p9)  ;;  %vm740_vm4 = vcmask (!%p275_p9), 1043456   ;;  %s1231_s17 = scalar_lea.vmem (!%p275_p9), [#allocation3], %s1138_s18 }
  0x1e   : > { %v1147_v4 = vld [vmem:[%s283_s23] sm:$0xff] (!%p275_p9)  ;;  %v1149_v5 = vld [vmem:[%s283_s23 + $0x8] sm:$0xf] (!%p275_p9)  ;;  %335 = vperm.xlu1 (!%p275_p9), %987, %v321_v8   ;;  %vm765_vm5 = vcmask (!%p275_p9), 1040384   ;;  %vm767_vm6 = vcmask (!%p275_p9), 1041408  }
  0x1f   : > { %v318_v7 = vpack.c.bf16 (!%p275_p9), %v1149_v5, %v1147_v4  ;;  %v424_v14 = vld [vmem:[%s1262_s4 + $0x8] sm:$0xff] (!%p275_p9)  ;;  %v426_v16 = vld [vmem:[%s1262_s4 + $0x18] sm:$0xff] (!%p275_p9)  ;;  %v898_v17 = vld [vmem:[%s1262_s4 + $0x20] sm:$0xff] (!%p275_p9) }
  0x20   : > { %v899_v18 = vld [vmem:[%s1262_s4 + $0x28] sm:$0xff] (!%p275_p9)  ;;  %v900_v19 = vld [vmem:[%s1262_s4 + $0x30] sm:$0xff] (!%p275_p9)  ;;  %v901_v20 = vld [vmem:[%s1262_s4 + $0x38] sm:$0xff] (!%p275_p9) }
  0x21   : > { %960 = vmatprep.subr.msk.bf16.mxu0 (!%p275_p9), %vm360_vm1, %v318_v7  ;;  %v362_v10 = vsel (!%p275_p9), %vm360_vm1, %v318_v7, 0  ;;  %330 = vperm.xlu0 (!%p275_p9), %986, %v320_v9   ;;  %v623_v21 = vld [vmem:[%s1264_s6] sm:$0xff] (!%p275_p9)  ;;  %v624_v22 = vld [vmem:[%s1264_s6 + $0x8] sm:$0xff] (!%p275_p9)  ;;  %v625_v23 = vld [vmem:[%s1264_s6 + $0x10] sm:$0x7] (!%p275_p9) }
  0x22   : > { %931 = vmatpush3.bf16.msra.mxu0 (!%p275_p9), %v362_v10  ;;  %340 = vperm.xlu1 (!%p275_p9), %987, %v322_v12   ;;  %v990_v24 = vld [vmem:[%s1261_s3] sm:$0xff] (!%p275_p9)   ;;  %v991_v43 = vld [vmem:[%s1261_s3 + $0x8] sm:$0xff] (!%p275_p9)   ;;  %v992_v44 = vld [vmem:[%s1261_s3 + $0x10] sm:$0xff] (!%p275_p9)  }
  0x23   : > { %940 = vmatprep.mubr.msk.bf16.mxu1 %vm457_vm2, %v990_v24  ;;  %v993_v63 = vld [vmem:[%s1261_s3 + $0x18] sm:$0xff]   ;;  %v994_v0 = vld [vmem:[%s1263_s5] sm:$0xff]   ;;  %s912_s18 = sshll.u32 (%p1125_p5), %s877_s27, 3 }
  0x24   : > { %s784_s21 = scalar_lea.vmem (%p1125_p5), %s1265_s7, %s912_s18 }
  0x25   : > { %933 = vmatmul.mubr.msk.bf16.vlgmr.msra.gmra.mrb[0].mxu0 %vm353_vm0, %v989_v11  ;;  %429 = vperm.xlu0 %986, %v423_v13  }
  0x26   : > { %434 = vperm.xlu1 %987, %v424_v14   ;;  %948 = vmatprep.mubr.msk.bf16.mxu0 %vm457_vm2, %v992_v44 }
  0x29   : > { %439 = vperm.xlu0 %986, %v425_v15  }
  0x2a   : > { %444 = vperm.xlu1 %987, %v426_v16  }
  0x2d   : > { %531 = vperm.xlu0 %986, %v898_v17  }
  0x2e   : > { %536 = vperm.xlu1 %987, %v899_v18  }
  0x31   : > { %541 = vperm.xlu0 %986, %v900_v19  }
  0x32   : > { %546 = vperm.xlu1 %987, %v901_v20  }
  0x35   : > { %628 = vperm.xlu0 %986, %v623_v21   ;;  %v995_v21 = vld [vmem:[%s1263_s5 + $0x8] ss:$0 sps:$4 sm:$0x33]  }
  0x36   : > { %633 = vperm.xlu1 %987, %v624_v22   ;;  %v705_v22 = vlaneseq }
  0x39   : > { %638 = vperm.xlu0 %986, %v625_v23  }
  0x9c   : > { %v326_v26 = vpop.permute.xlu0 %325 }
  0x9d   : > { %v336_v25 = vpop.permute.xlu1 %335 }
  0xa0   : > { %v331_v33 = vpop.permute.xlu0 %330 }
  0xa1   : > { %v341_v30 = vpop.permute.xlu1 %340 }
  0xa4   : > { %v430_v45 = vpop.permute.xlu0 %429 }
  0xa5   : > { %v435_v46 = vpop.permute.xlu1 %434 }
  0xa8   : > { %v440_v47 = vpop.permute.xlu0 %439 }
  0xa9   : > { %v445_v51 = vpop.permute.xlu1 %444 }
  0xac   : > { %v532_v1 = vpop.permute.xlu0 %531 }
  0xad   : > { %v537_v2 = vpop.permute.xlu1 %536 }
  0xb0   : > { %v542_v3 = vpop.permute.xlu0 %541 }
  0xb1   : > { %v547_v9 = vpop.permute.xlu1 %546 }
  0xb4   : > { %v629_v24 = vpop.permute.xlu0 %628 }
  0xf8   : > { %v934_v27 = vpop.f32.mrb[0].mxu0 }
  0xf9   : > { %v407_v28 = vadd.f32 %v934_v27, %v336_v25  ;;  %v398_v29 = vpop.f32.mrb[1].mxu0 }
  0xfa   : > { %v399_v31 = vadd.f32 %v398_v29, %v326_v26  ;;  %v935_v32 = vpop.f32.mrb[2].mxu0  ;;  %v706_v26 = vshrl.u32 %v705_v22, 7  ;;  %v634_v29 = vpop.permute.xlu1 %633 }
  0xfb   : > { %996 = vtanh.f32 %v407_v28  ;;  %v410_v34 = vadd.f32 %v935_v32, %v341_v30  ;;  %v401_v35 = vpop.f32.mrb[3].mxu0 }
  0xfc   : > { %998 = vtanh.f32 %v399_v31  ;;  %v402_v36 = vadd.f32 %v401_v35, %v331_v33  ;;  %vm707_vm3 = vcmp.lt.s32.totalorder %v706_v26, 4 }
  0xfd   : > { %1000 = vtanh.f32 %v410_v34 }
  0xfe   : > { %1002 = vtanh.f32 %v402_v36 }
 0x105   : > { %v997_v37 = vpop.eup %996 }
 0x106   : > { %v999_v38 = vpop.eup %998 }
 0x107   : > { %v1001_v39 = vpop.eup %1000 }
 0x108   : > { %v1003_v40 = vpop.eup %1002  ;;  %v422_v41 = vpack.c.bf16 %v1001_v39, %v997_v37 }
 0x109   : > { %v421_v42 = vpack.c.bf16 %v1003_v40, %v999_v38 }
 0x10b   : > { %936 = vmatprep.subr.bf16.mxu1 %v421_v42 }
 0x10c   : > { %937 = vmatpush3.bf16.msra.mxu1 %v421_v42 }
 0x10d   : > { %938 = vmatprep.subr.bf16.mxu1 %v422_v41 }
 0x110   : > { %939 = vmatpush3.bf16.msra.mxu1 %v422_v41 }
 0x113   : > { %941 = vmatmul.mubr.msk.bf16.vlgmr.msra.gmra.mrb[0].mxu1 %vm457_vm2, %v991_v43 }
 0x114   : > { %956 = vmatprep.mubr.msk.bf16.mxu1 %vm457_vm2, %v994_v0 }
 0x1e6   : > { %v942_v48 = vpop.f32.mrb[0].mxu1 }
 0x1e7   : > { %v507_v49 = vadd.f32 %v942_v48, %v440_v47  ;;  %v498_v50 = vpop.f32.mrb[1].mxu1 }
 0x1e8   : > { %v499_v52 = vadd.f32 %v498_v50, %v430_v45  ;;  %v943_v53 = vpop.f32.mrb[2].mxu1 }
 0x1e9   : > { %1004 = vtanh.f32 %v507_v49  ;;  %v510_v54 = vadd.f32 %v943_v53, %v445_v51  ;;  %v501_v55 = vpop.f32.mrb[3].mxu1 }
 0x1ea   : > { %1006 = vtanh.f32 %v499_v52  ;;  %v502_v56 = vadd.f32 %v501_v55, %v435_v46  ;;  %v639_v52 = vpop.permute.xlu0 %638 }
 0x1eb   : > { %1008 = vtanh.f32 %v510_v54 }
 0x1ec   : > { %1010 = vtanh.f32 %v502_v56 }
 0x1f3   : > { %v1005_v57 = vpop.eup %1004 }
 0x1f4   : > { %v1007_v58 = vpop.eup %1006 }
 0x1f5   : > { %v1009_v59 = vpop.eup %1008 }
 0x1f6   : > { %v1011_v60 = vpop.eup %1010  ;;  %v523_v61 = vpack.c.bf16 %v1009_v59, %v1005_v57 }
 0x1f7   : > { %v522_v62 = vpack.c.bf16 %v1011_v60, %v1007_v58 }
 0x1f9   : > { %944 = vmatprep.subr.bf16.mxu0 %v522_v62 }
 0x1fa   : > { %945 = vmatpush3.bf16.msra.mxu0 %v522_v62 }
 0x1fb   : > { %946 = vmatprep.subr.bf16.mxu0 %v523_v61 }
 0x1fe   : > { %947 = vmatpush3.bf16.msra.mxu0 %v523_v61 }
 0x201   : > { %949 = vmatmul.mubr.msk.bf16.vlgmr.msra.gmra.mrb[4].mxu0 %vm457_vm2, %v993_v63 }
 0x2d4   : > { %v950_v6 = vpop.f32.mrb[4].mxu0 }
 0x2d5   : > { %v608_v7 = vadd.f32 %v950_v6, %v542_v3  ;;  %v599_v8 = vpop.f32.mrb[5].mxu0 }
 0x2d6   : > { %v600_v10 = vadd.f32 %v599_v8, %v532_v1  ;;  %v951_v11 = vpop.f32.mrb[6].mxu0 }
 0x2d7   : > { %1012 = vtanh.f32 %v608_v7  ;;  %v611_v12 = vadd.f32 %v951_v11, %v547_v9  ;;  %v602_v13 = vpop.f32.mrb[7].mxu0 }
 0x2d8   : > { %1014 = vtanh.f32 %v600_v10  ;;  %v603_v14 = vadd.f32 %v602_v13, %v537_v2 }
 0x2d9   : > { %1016 = vtanh.f32 %v611_v12 }
 0x2da   : > { %1018 = vtanh.f32 %v603_v14 }
 0x2e1   : > { %v1013_v15 = vpop.eup %1012 }
 0x2e2   : > { %v1015_v16 = vpop.eup %1014 }
 0x2e3   : > { %v1017_v17 = vpop.eup %1016 }
 0x2e4   : > { %v1019_v18 = vpop.eup %1018  ;;  %v622_v19 = vpack.c.bf16 %v1017_v17, %v1013_v15 }
 0x2e5   : > { %v621_v20 = vpack.c.bf16 %v1019_v18, %v1015_v16 }
 0x2e7   : > { %952 = vmatprep.subr.bf16.mxu1 %v621_v20 }
 0x2e8   : > { %953 = vmatpush3.bf16.msra.mxu1 %v621_v20 }
 0x2e9   : > { %954 = vmatprep.subr.bf16.mxu1 %v622_v19 }
 0x2ec   : > { %955 = vmatpush3.bf16.msra.mxu1 %v622_v19 }
 0x2ef   : > { %957 = vmatmul.mubr.msk.bf16.vlgmr.msra.gmra.mrb[4].mxu1 %vm457_vm2, %v995_v21 }
 0x3c2   : > { %v958_v23 = vpop.f32.mrb[4].mxu1 }
 0x3c3   : > { %v689_v25 = vpop.f32.mrb[5].mxu1  ;;  %v698_v53 = vadd.f32 %v958_v23, %v639_v52 }
 0x3c4   : > { %v690_v27 = vadd.f32 %v689_v25, %v629_v24  ;;  %v959_v28 = vpop.f32.mrb[6].mxu1 }
 0x3c5   : > { %v692_v30 = vpop.f32.mrb[7].mxu1  ;;  %v910_v54 = vmul.f32 -1.442695, %v698_v53 }
 0x3c6   : > { %v693_v31 = vadd.f32 %v692_v30, %v634_v29  ;;  %v703_v32 = vrot.slane %v690_v27, 4 }
 0x3c8   : > { %v704_v33 = vrot.slane %v693_v31, 4 }
 0x3ca   : > { %v708_v34 = vsel %vm707_vm3, %v703_v32, %v704_v33  ;;  %v709_v35 = vsel %vm707_vm3, %v704_v33, %v703_v32 }
 0x3cb   : > { %v710_v36 = vmax.f32 %v690_v27, %v709_v35  ;;  %v711_v37 = vmax.f32 %v693_v31, %v708_v34 }
 0x3cd   : > { %v712_v38 = vmax.f32 %v710_v36, %v711_v37 }
 0x3cf   : > { %v713_v39 = vsub.f32 %v690_v27, %v712_v38  ;;  %v714_v40 = vsub.f32 %v693_v31, %v712_v38 }
 0x3d1   : > { %v715_v41 = vmul.f32 1.442695, %v713_v39  ;;  %v717_v42 = vmul.f32 1.442695, %v714_v40 }
 0x3d3   : > { %1020 = vpow2.f32 %v715_v41 }
 0x3d4   : > { %1022 = vpow2.f32 %v717_v42 }
 0x3dd   : > { %v1021_v43 = vpop.eup %1020 }
 0x3de   : > { %v719_v44 = vrot.slane %v1021_v43, 4  ;;  %v1023_v45 = vpop.eup %1022 }
 0x3df   : > { %v720_v46 = vrot.slane %v1023_v45, 4 }
 0x3e1   : > { %v721_v47 = vsel %vm707_vm3, %v719_v44, %v720_v46  ;;  %v722_v48 = vsel %vm707_vm3, %v720_v46, %v719_v44 }
 0x3e2   : > { %v723_v49 = vadd.f32 %v1021_v43, %v722_v48  ;;  %v724_v50 = vadd.f32 %v1023_v45, %v721_v47 }
 0x3e4   : > { %v725_v51 = vadd.f32 %v724_v50, %v723_v49 }
 0x3e6   : > { %1024 = vrcp.f32 %v725_v51 }
 0x3e7   : > { %1026 = vpow2.f32 %v910_v54 }
 0x3f0   : > { %v1025_v55 = vpop.eup %1024 }
 0x3f1   : > { %v727_v56 = vmul.f32 %v1025_v55, %v725_v51  ;;  %v1027_v63 = vpop.eup %1026 }
 0x3f2   : > { %v735_v7 = vadd.f32 1.0, %v1027_v63 }
 0x3f3   : > { %v728_v57 = vsub.f32 2.0, %v727_v56 }
 0x3f4   : > { %1028 = vrcp.f32 %v735_v7 }
 0x3f5   : > { %v729_v58 = vmul.f32 %v1025_v55, %v728_v57 }
 0x3f7   : > { %v730_v59 = vmul.f32 %v1021_v43, %v729_v58  ;;  %v731_v60 = vmul.f32 %v1023_v45, %v729_v58 }
 0x3f9   : > { %v738_v61 = vmul.f32 %v730_v59, %v1147_v4  ;;  %v739_v62 = vmul.f32 %v731_v60, %v1149_v5  ;;  %774 = vst [vmem:[%s1231_s17] sm:$0xff] %v730_v59 }
 0x3fb   : > { %v741_v0 = vsel %vm740_vm4, %v738_v61, 0.0  ;;  %v749_v1 = vrot.slane %v738_v61, 4  ;;  %v758_v2 = vsel %vm740_vm4, %v739_v62, 0.0 }
 0x3fc   : > { %v742_v3 = vrot.slane %v741_v0, 4  ;;  %v759_v6 = vrot.slane %v758_v2, 4 }
 0x3fd   : > { %v751_v8 = vsel %vm740_vm4, %v749_v1, 0.0 }
 0x3fe   : > { %v743_v9 = vadd.f32 %v742_v3, %v741_v0  ;;  %v752_v10 = vrot.slane %v751_v8, 4  ;;  %v760_v4 = vadd.f32 %v759_v6, %v758_v2  ;;  %v1029_v24 = vpop.eup %1028 }
 0x400   : > { %v744_v11 = vrot.slane %v743_v9, 2  ;;  %v753_v5 = vadd.f32 %v752_v10, %v751_v8  ;;  %v761_v12 = vrot.slane %v760_v4, 2  ;;  %v814_v29 = vld [vmem:[%s1231_s17] sm:$0xff] (%p1125_p5) }
 0x401   : > { %815 = vst [vmem:[%s784_s21] sm:$0xff] (%p1125_p5), %v814_v29 }
 0x402   : > { %v745_v13 = vadd.f32 %v744_v11, %v743_v9  ;;  %v754_v14 = vrot.slane %v753_v5, 2  ;;  %v762_v15 = vadd.f32 %v761_v12, %v760_v4 }
 0x404   : > { %v746_v16 = vrot.slane %v745_v13, 1  ;;  %v755_v17 = vadd.f32 %v754_v14, %v753_v5  ;;  %v763_v18 = vrot.slane %v762_v15, 1 }
 0x406   : > { %v756_v19 = vrot.slane %v755_v17, 1  ;;  %v747_v20 = vadd.f32 %v746_v16, %v745_v13  ;;  %v764_v22 = vadd.f32 %v763_v18, %v762_v15 }
 0x408   : > { %v757_v21 = vadd.f32 %v756_v19, %v755_v17 }
 0x40a   : > { %v766_v23 = vsel %vm765_vm5, %v747_v20, %v757_v21 }
 0x40b   : > { %v768_v25 = vsel %vm767_vm6, %v766_v23, %v764_v22  ;;  %782 = sbr.rel (!%p1125_p5) target bundleno = 1050 (0x41a), region = 90 }
 0x40c   : > { %v769_v26 = vmul.f32 %v1029_v24, %v768_v25 }
 0x40e   : > { %v771_v27 = vrot.slane %v769_v26, 4 }
 0x410   : > { %v773_v28 = vsel %vm740_vm4, %v731_v60, %v771_v27 }
 0x411   : > { %775 = vst [vmem:[%s1231_s17 + $0x8] sm:$0x7f] %v773_v28 }
 0x418   : > { %v816_v30 = vld [vmem:[%s1231_s17 + $0x8] sm:$0xff] }
 0x419   : > { %817 = vst [vmem:[%s784_s21 + $0x10] sm:$0xff] %v816_v30 }
 0x41a PF: > { %p14_p10 = scmp.ge.s32.totalorder %s1112_s28, 4   ;;  %s1267_s24 = smov %s1048_s25 }
 0x41b   : > { %s1268_s25 = smov %s1123_s8  ;;  %s1269_s26 = smov %s1112_s28 }
 0x41c   :  { %16 = sbr.rel (!%p14_p10) target bundleno = 2 (0x2), region = 161 }

</bundles_post_ra>
